<compile_context>
chip_gen: v5e
topology: v5e:2x2
jax: 0.10.0
libtpu: 0.0.40
codegen_flags: <defaults>
</compile_context>

<pallas_src>
import math
from functools import partial

import jax
import jax.numpy as jnp
import numpy as np
from jax import lax
from jax.experimental import pallas as pl
from jax.experimental.pallas import tpu as pltpu

_EPS = 1e-12  # F.normalize default: x / max(||x||_2, eps)


def _rms_normalize(x, gain):
    """x / max(||x||_2, eps) * gain, computed in f32 (eps^2 = 1e-24 needs f32)."""
    xf = x.astype(jnp.float32)
    ss = jnp.sum(xf * xf, axis=-1, keepdims=True)          # XLU cross-lane reduce
    inv = lax.rsqrt(jnp.maximum(ss, _EPS * _EPS))           # EUP rsqrt
    return xf * inv * gain


# --------------------------- tiled (production) path ---------------------------

def _tiled_kernel(Tb, Tf, scale, g_ref, b_ref, f_ref, h_ref, o_ref):
    """One (TS, D) row tile per grid step; segment chosen by the tile index."""
    t = pl.program_id(1)
    gain = scale * g_ref[0]                                 # sqrt(dim) * g (SMEM)

    def emit(x_ref):
        o_ref[...] = _rms_normalize(x_ref[...], gain).astype(o_ref.dtype)

    @pl.when(t < Tb)
    def _():
        emit(b_ref)

    @pl.when(jnp.logical_and(t >= Tb, t < Tb + Tf))
    def _():
        emit(f_ref)

    @pl.when(t >= Tb + Tf)
    def _():
        emit(h_ref)


# ------------------------------- fallback path --------------------------------

def _fallback_kernel(Sb, Sf, Sh, scale, g_ref, b_ref, f_ref, h_ref, o_ref):
    gain = scale * g_ref[0]
    o_ref[0:Sb, :] = _rms_normalize(b_ref[...], gain).astype(o_ref.dtype)
    o_ref[Sb:Sb + Sf, :] = _rms_normalize(f_ref[...], gain).astype(o_ref.dtype)
    o_ref[Sb + Sf:Sb + Sf + Sh, :] = _rms_normalize(h_ref[...], gain).astype(o_ref.dtype)


def _pick_row_tile(Sb, Sf, Sh, D, itemsize):
    """Largest multiple-of-8 row tile dividing every segment, capped for VMEM."""
    g = math.gcd(math.gcd(Sb, Sf), Sh)
    if g <= 0 or g % 8 != 0:
        return None
    # 2 buffers x (3 inputs + 1 output) x TS x D x itemsize  <=  ~16 MiB
    cap = max(8, (16 * 1024 * 1024) // (8 * D * itemsize))
    cap = min(cap, 512)                                      # measured sweet spot
    ts = None
    for cand in range(8, g + 1, 8):
        if g % cand == 0 and cand <= cap:
            ts = cand
    return ts


def fusion_forward(params, b, f, hs):
    """b: (B, Sb, D), f: (B, Sf, D), hs: (B, Sh, D)  ->  (B, Sb+Sf+Sh, D)."""
    B, Sb, D = b.shape
    Bf, Sf, Df = f.shape
    Bh, Sh, Dh = hs.shape
    assert B == Bf == Bh and D == Df == Dh
    S = Sb + Sf + Sh
    scale = float(D) ** 0.5
    out_dtype = b.dtype
    itemsize = int(jnp.dtype(out_dtype).itemsize)

    g = jnp.asarray(params["g"], jnp.float32).reshape(1)     # scalar RMSNorm gain

    cost = pl.CostEstimate(
        flops=3 * B * S * D,
        transcendentals=B * S,
        bytes_accessed=2 * B * S * D * itemsize,
    )

    ts = _pick_row_tile(Sb, Sf, Sh, D, max(itemsize, 4))
    if ts is not None:
        # ---- tiled path: aligned segments, long pipelined grid ----
        Tb, Tf, Th = Sb // ts, Sf // ts, Sh // ts
        T = Tb + Tf + Th
        grid_spec = pltpu.PrefetchScalarGridSpec(
            num_scalar_prefetch=0,
            grid=(B, T),
            in_specs=[
                pl.BlockSpec(memory_space=pltpu.MemorySpace.SMEM),        # g
                pl.BlockSpec((pl.Squeezed(), ts, D),
                             lambda i, t: (i, jnp.minimum(t, Tb - 1), 0)),  # b
                pl.BlockSpec((pl.Squeezed(), ts, D),
                             lambda i, t: (i, jnp.clip(t - Tb, 0, Tf - 1), 0)),  # f
                pl.BlockSpec((pl.Squeezed(), ts, D),
                             lambda i, t: (i, jnp.clip(t - Tb - Tf, 0, Th - 1), 0)),  # hs
            ],
            out_specs=pl.BlockSpec((pl.Squeezed(), ts, D), lambda i, t: (i, t, 0)),
        )
        kernel = partial(_tiled_kernel, Tb, Tf, scale)
        dims = ("parallel", "parallel")
    else:
        # ---- fallback path: whole concatenated row block per batch ----
        grid_spec = pltpu.PrefetchScalarGridSpec(
            num_scalar_prefetch=0,
            grid=(B,),
            in_specs=[
                pl.BlockSpec(memory_space=pltpu.MemorySpace.SMEM),        # g
                pl.BlockSpec((pl.Squeezed(), Sb, D), lambda i: (i, 0, 0)),
                pl.BlockSpec((pl.Squeezed(), Sf, D), lambda i: (i, 0, 0)),
                pl.BlockSpec((pl.Squeezed(), Sh, D), lambda i: (i, 0, 0)),
            ],
            out_specs=pl.BlockSpec((pl.Squeezed(), S, D), lambda i: (i, 0, 0)),
        )
        kernel = partial(_fallback_kernel, Sb, Sf, Sh, scale)
        dims = ("parallel",)

    return pl.pallas_call(
        kernel,
        grid_spec=grid_spec,
        out_shape=jax.ShapeDtypeStruct((B, S, D), out_dtype),
        cost_estimate=cost,
        compiler_params=pltpu.CompilerParams(
            dimension_semantics=dims,
            vmem_limit_bytes=32 * 1024 * 1024,
        ),
    )(g, b, f, hs)


def reference(params, b, f, hs):
    """Pure-JAX mirror of the torch forward (for correctness checking)."""
    x = jnp.concatenate([b, f, hs], axis=-2)
    D = x.shape[-1]
    n = jnp.sqrt(jnp.sum(x * x, axis=-1, keepdims=True))
    return x / jnp.maximum(n, _EPS) * math.sqrt(D) * params["g"]


if __name__ == "__main__":
    key = jax.random.PRNGKey(0)
    kb, kf, kh, kg = jax.random.split(key, 4)

    # RMSNorm has a single scalar gain parameter (nn.Parameter(torch.ones(1))).
    params = {"g": 1.0 + 0.1 * jax.random.normal(kg, (1,), jnp.float32)}

    # ---- tiled path: sublane-aligned segments, lane-dense D (multiple of 128) ----
    B, D = 2, 128
    Sb, Sf, Sh = 32, 64, 32
    b = jax.random.normal(kb, (B, Sb, D), jnp.float32)
    f = jax.random.normal(kf, (B, Sf, D), jnp.float32)
    hs = jax.random.normal(kh, (B, Sh, D), jnp.float32)

    out = jax.block_until_ready(fusion_forward(params, b, f, hs))
    ref = reference(params, b, f, hs)
    np.testing.assert_allclose(np.asarray(out), np.asarray(ref), rtol=1e-5, atol=1e-5)
    assert out.shape == (B, Sb + Sf + Sh, D)

    # ---- fallback path: tiny / unaligned shapes (general-shape correctness) ----
    B2, D2 = 2, 32
    Sb2, Sf2, Sh2 = 4, 6, 8
    b2 = jax.random.normal(kb, (B2, Sb2, D2), jnp.float32)
    f2 = jax.random.normal(kf, (B2, Sf2, D2), jnp.float32)
    hs2 = jax.random.normal(kh, (B2, Sh2, D2), jnp.float32)

    out2 = jax.block_until_ready(fusion_forward(params, b2, f2, hs2))
    ref2 = reference(params, b2, f2, hs2)
    np.testing.assert_allclose(np.asarray(out2), np.asarray(ref2), rtol=1e-5, atol=1e-5)
    assert out2.shape == (B2, Sb2 + Sf2 + Sh2, D2)

    print("KERNEL_OK")
</pallas_src>

<mosaic_0001>
module attributes {stable_mosaic.version = 11 : i64} {
  func.func @_tiled_kernel(%arg0: i32, %arg1: i32, %arg2: memref<1xf32, #tpu.memory_space<smem>>, %arg3: memref<1x32x128xf32, #tpu.memory_space<vmem>>, %arg4: memref<1x32x128xf32, #tpu.memory_space<vmem>>, %arg5: memref<1x32x128xf32, #tpu.memory_space<vmem>>, %arg6: memref<1x32x128xf32, #tpu.memory_space<vmem>>) attributes {dimension_semantics = [#tpu.dimension_semantics<parallel>, #tpu.dimension_semantics<parallel>], iteration_bounds = array<i64: 2, 4>, scalar_prefetch = 0 : i64, scratch_operands = 0 : i64, tpu.core_type = #tpu.core_type<tc>, window_params = [{transform_indices = @transform_0, window_bounds = array<i64: 1>}, {transform_indices = @transform_1, window_bounds = array<i64: 1, 32, 128>}, {transform_indices = @transform_2, window_bounds = array<i64: 1, 32, 128>}, {transform_indices = @transform_3, window_bounds = array<i64: 1, 32, 128>}, {transform_indices = @transform_4, window_bounds = array<i64: 1, 32, 128>}]} {
    %c0 = arith.constant 0 : index
    %0 = memref.load %arg2[%c0] : memref<1xf32, #tpu.memory_space<smem>>
    %cst = arith.constant 11.3137083 : f32
    %1 = arith.mulf %cst, %0 : f32
    %c1_i32 = arith.constant 1 : i32
    %2 = arith.cmpi slt, %arg1, %c1_i32 : i32
    %3 = arith.extui %2 : i1 to i32
    %c0_i32 = arith.constant 0 : i32
    %4 = arith.cmpi ne, %3, %c0_i32 : i32
    scf.if %4 {
      %c0_4 = arith.constant 0 : index
      %c0_5 = arith.constant 0 : index
      %c0_6 = arith.constant 0 : index
      %13 = vector.load %arg3[%c0_4, %c0_5, %c0_6] : memref<1x32x128xf32, #tpu.memory_space<vmem>>, vector<1x32x128xf32>
      %14 = vector.shape_cast %13 : vector<1x32x128xf32> to vector<32x128xf32>
      %15 = arith.mulf %14, %14 : vector<32x128xf32>
      %cst_7 = arith.constant dense<0.000000e+00> : vector<32xf32>
      %16 = vector.multi_reduction <add>, %15, %cst_7 [1] : vector<32x128xf32> to vector<32xf32>
      %17 = vector.shape_cast %16 : vector<32xf32> to vector<32x1xf32>
      %cst_8 = arith.constant 1.000000e-24 : f32
      %18 = vector.broadcast %cst_8 : f32 to vector<32x1xf32>
      %19 = arith.maximumf %17, %18 : vector<32x1xf32>
      %20 = math.rsqrt %19 : vector<32x1xf32>
      %21 = vector.broadcast %20 : vector<32x1xf32> to vector<32x128xf32>
      %22 = arith.mulf %14, %21 : vector<32x128xf32>
      %23 = vector.broadcast %1 : f32 to vector<32x128xf32>
      %24 = arith.mulf %22, %23 : vector<32x128xf32>
      %c0_9 = arith.constant 0 : index
      %c0_10 = arith.constant 0 : index
      %c0_11 = arith.constant 0 : index
      %25 = vector.load %arg6[%c0_9, %c0_10, %c0_11] : memref<1x32x128xf32, #tpu.memory_space<vmem>>, vector<1x32x128xf32>
      %26 = vector.shape_cast %25 : vector<1x32x128xf32> to vector<32x128xf32>
      %27 = vector.shape_cast %24 : vector<32x128xf32> to vector<1x32x128xf32>
      tpu.vector_store %arg6[%c0_9, %c0_10, %c0_11], %27 {strides = array<i32>} : memref<1x32x128xf32, #tpu.memory_space<vmem>>, vector<1x32x128xf32>,
    } else {
    }
    %c1_i32_0 = arith.constant 1 : i32
    %5 = arith.cmpi sge, %arg1, %c1_i32_0 : i32
    %c3_i32 = arith.constant 3 : i32
    %6 = arith.cmpi slt, %arg1, %c3_i32 : i32
    %7 = arith.andi %5, %6 : i1
    %8 = arith.extui %7 : i1 to i32
    %c0_i32_1 = arith.constant 0 : i32
    %9 = arith.cmpi ne, %8, %c0_i32_1 : i32
    scf.if %9 {
      %c0_4 = arith.constant 0 : index
      %c0_5 = arith.constant 0 : index
      %c0_6 = arith.constant 0 : index
      %13 = vector.load %arg4[%c0_4, %c0_5, %c0_6] : memref<1x32x128xf32, #tpu.memory_space<vmem>>, vector<1x32x128xf32>
      %14 = vector.shape_cast %13 : vector<1x32x128xf32> to vector<32x128xf32>
      %15 = arith.mulf %14, %14 : vector<32x128xf32>
      %cst_7 = arith.constant dense<0.000000e+00> : vector<32xf32>
      %16 = vector.multi_reduction <add>, %15, %cst_7 [1] : vector<32x128xf32> to vector<32xf32>
      %17 = vector.shape_cast %16 : vector<32xf32> to vector<32x1xf32>
      %cst_8 = arith.constant 1.000000e-24 : f32
      %18 = vector.broadcast %cst_8 : f32 to vector<32x1xf32>
      %19 = arith.maximumf %17, %18 : vector<32x1xf32>
      %20 = math.rsqrt %19 : vector<32x1xf32>
      %21 = vector.broadcast %20 : vector<32x1xf32> to vector<32x128xf32>
      %22 = arith.mulf %14, %21 : vector<32x128xf32>
      %23 = vector.broadcast %1 : f32 to vector<32x128xf32>
      %24 = arith.mulf %22, %23 : vector<32x128xf32>
      %c0_9 = arith.constant 0 : index
      %c0_10 = arith.constant 0 : index
      %c0_11 = arith.constant 0 : index
      %25 = vector.load %arg6[%c0_9, %c0_10, %c0_11] : memref<1x32x128xf32, #tpu.memory_space<vmem>>, vector<1x32x128xf32>
      %26 = vector.shape_cast %25 : vector<1x32x128xf32> to vector<32x128xf32>
      %27 = vector.shape_cast %24 : vector<32x128xf32> to vector<1x32x128xf32>
      tpu.vector_store %arg6[%c0_9, %c0_10, %c0_11], %27 {strides = array<i32>} : memref<1x32x128xf32, #tpu.memory_space<vmem>>, vector<1x32x128xf32>,
    } else {
    }
    %c3_i32_2 = arith.constant 3 : i32
    %10 = arith.cmpi sge, %arg1, %c3_i32_2 : i32
    %11 = arith.extui %10 : i1 to i32
    %c0_i32_3 = arith.constant 0 : i32
    %12 = arith.cmpi ne, %11, %c0_i32_3 : i32
    scf.if %12 {
      %c0_4 = arith.constant 0 : index
      %c0_5 = arith.constant 0 : index
      %c0_6 = arith.constant 0 : index
      %13 = vector.load %arg5[%c0_4, %c0_5, %c0_6] : memref<1x32x128xf32, #tpu.memory_space<vmem>>, vector<1x32x128xf32>
      %14 = vector.shape_cast %13 : vector<1x32x128xf32> to vector<32x128xf32>
      %15 = arith.mulf %14, %14 : vector<32x128xf32>
      %cst_7 = arith.constant dense<0.000000e+00> : vector<32xf32>
      %16 = vector.multi_reduction <add>, %15, %cst_7 [1] : vector<32x128xf32> to vector<32xf32>
      %17 = vector.shape_cast %16 : vector<32xf32> to vector<32x1xf32>
      %cst_8 = arith.constant 1.000000e-24 : f32
      %18 = vector.broadcast %cst_8 : f32 to vector<32x1xf32>
      %19 = arith.maximumf %17, %18 : vector<32x1xf32>
      %20 = math.rsqrt %19 : vector<32x1xf32>
      %21 = vector.broadcast %20 : vector<32x1xf32> to vector<32x128xf32>
      %22 = arith.mulf %14, %21 : vector<32x128xf32>
      %23 = vector.broadcast %1 : f32 to vector<32x128xf32>
      %24 = arith.mulf %22, %23 : vector<32x128xf32>
      %c0_9 = arith.constant 0 : index
      %c0_10 = arith.constant 0 : index
      %c0_11 = arith.constant 0 : index
      %25 = vector.load %arg6[%c0_9, %c0_10, %c0_11] : memref<1x32x128xf32, #tpu.memory_space<vmem>>, vector<1x32x128xf32>
      %26 = vector.shape_cast %25 : vector<1x32x128xf32> to vector<32x128xf32>
      %27 = vector.shape_cast %24 : vector<32x128xf32> to vector<1x32x128xf32>
      tpu.vector_store %arg6[%c0_9, %c0_10, %c0_11], %27 {strides = array<i32>} : memref<1x32x128xf32, #tpu.memory_space<vmem>>, vector<1x32x128xf32>,
    } else {
    }
    return
  }
  func.func @transform_0(%arg0: i32, %arg1: i32) -> i32 {
    %c0_i32 = arith.constant 0 : i32
    %c0_i32_0 = arith.constant 0 : i32
    return %c0_i32 : i32
  }
  func.func @transform_1(%arg0: i32, %arg1: i32) -> (i32, i32, i32) {
    %c0_i32 = arith.constant 0 : i32
    %0 = arith.minsi %arg1, %c0_i32 : i32
    %c0_i32_0 = arith.constant 0 : i32
    %c0_i32_1 = arith.constant 0 : i32
    return %arg0, %0, %c0_i32_0 : i32, i32, i32
  }
  func.func @transform_2(%arg0: i32, %arg1: i32) -> (i32, i32, i32) {
    %c1_i32 = arith.constant 1 : i32
    %0 = arith.subi %arg1, %c1_i32 : i32
    %c0_i32 = arith.constant 0 : i32
    %c1_i32_0 = arith.constant 1 : i32
    %1 = arith.maxsi %c0_i32, %0 : i32
    %2 = arith.minsi %c1_i32_0, %1 : i32
    %c0_i32_1 = arith.constant 0 : i32
    %c0_i32_2 = arith.constant 0 : i32
    return %arg0, %2, %c0_i32_1 : i32, i32, i32
  }
  func.func @transform_3(%arg0: i32, %arg1: i32) -> (i32, i32, i32) {
    %c1_i32 = arith.constant 1 : i32
    %0 = arith.subi %arg1, %c1_i32 : i32
    %c2_i32 = arith.constant 2 : i32
    %1 = arith.subi %0, %c2_i32 : i32
    %c0_i32 = arith.constant 0 : i32
    %c0_i32_0 = arith.constant 0 : i32
    %2 = arith.maxsi %c0_i32, %1 : i32
    %3 = arith.minsi %c0_i32_0, %2 : i32
    %c0_i32_1 = arith.constant 0 : i32
    %c0_i32_2 = arith.constant 0 : i32
    return %arg0, %3, %c0_i32_1 : i32, i32, i32
  }
  func.func @transform_4(%arg0: i32, %arg1: i32) -> (i32, i32, i32) {
    %c0_i32 = arith.constant 0 : i32
    %c0_i32_0 = arith.constant 0 : i32
    return %arg0, %arg1, %c0_i32 : i32, i32, i32
  }
}

</mosaic_0001>

<bundles_post_ra>
// kernel: tpu_custom_call.1
= control target key start
LH: loop header
LB: loop body
LE: loop exit
PB: predicated region body
PF: predicated region fallthrough
CT: control target
= control target key end

     0   :  { %s1764_s0 = inlined_call_operand.<no memory space> [shape: f32[1], index: 0, kind: input, shape index: {}]   ;;  %s1765_s1 = inlined_call_operand.hbm [shape: f32[2,32,128], index: 1, kind: input, shape index: {}]   ;;  %s1766_s2 = inlined_call_operand.hbm [shape: f32[2,64,128], index: 2, kind: input, shape index: {}]   ;;  %s1767_s3 = inlined_call_operand.hbm [shape: f32[2,32,128], index: 3, kind: input, shape index: {}]   ;;  %s1768_s4 = inlined_call_operand.hbm [shape: f32[2,128,128], index: 4, kind: output, shape index: {}]  }
   0x1   :  { %1786 = sst [smem:[#allocation27_spill]] %s1766_s2 }
   0x2   :  { %1787 = sst [smem:[#allocation28_spill]] %s1768_s4 }
   0x3   :  { %9 = sst [smem:[#allocation2]] %s1764_s0 }
   0x4   :  { %10 = vsyncpa [#allocation4], 0 }
   0x5   :  { %12 = vsyncpa [#allocation4 + $0x1], 0 }
   0x6   :  { %13 = vsyncpa [#allocation7], 0 }
   0x7   :  { %15 = vsyncpa [#allocation7 + $0x1], 0 }
   0x8   :  { %16 = vsyncpa [#allocation5], 0 }
   0x9   :  { %18 = vsyncpa [#allocation5 + $0x1], 0  ;;  %s1333_s17 = smov 0   ;;  %s1335_s18 = smov 0  }
   0xa   :  { %s1337_s19 = smov 0   ;;  %s1339_s20 = smov 0  }
   0xb   :  { %s1341_s21 = smov 0   ;;  %s1343_s22 = smov 0  }
   0xc   :  { %s1345_s23 = smov 0   ;;  %s1347_s0 = smov 0  }
   0xd   :  { %s1349_s24 = smov 0   ;;  %s1351_s25 = smov 0  }
   0xe   :  { %s1353_s26 = smov 0   ;;  %s1355_s27 = smov 0  }
   0xf   :  { %s1357_s28 = smov 0   ;;  %s1359_s29 = smov 0  }
  0x10   :  { %s1361_s30 = smov 0   ;;  %s1363_s5 = smov 0  }
  0x11   :  { %s1365_s6 = smov 0  }
  0x12 LB: > { %1788 = sst [smem:[#allocation14_spill]] %s1235_s17  ;;  %s1419_s7 = sadd.s32 4294967295, %s1299_s6   ;;  %s1299_s6 = sphi %s1365_s6, %s24_s6   ;;  %s1295_s5 = sphi %s1363_s5, %s1847_s5   ;;  %s1291_s30 = sphi %s1361_s30, %s1836_s30   ;;  %s1287_s29 = sphi %s1359_s29, %s1835_s29   ;;  %s1283_s28 = sphi %s1357_s28, %s1846_s28   ;;  %s1279_s27 = sphi %s1355_s27, %s1845_s27   ;;  %s1275_s26 = sphi %s1353_s26, %s1844_s26   ;;  %s1271_s25 = sphi %s1351_s25, %s1843_s25   ;;  %s1267_s24 = sphi %s1349_s24, %s1833_s24   ;;  %s1263_s0 = sphi %s1347_s0, %s1832_s0   ;;  %s1259_s23 = sphi %s1345_s23, %s1831_s23   ;;  %s1255_s22 = sphi %s1343_s22, %s1842_s22   ;;  %s1251_s21 = sphi %s1341_s21, %s1841_s21   ;;  %s1247_s20 = sphi %s1339_s20, %s1840_s20   ;;  %s1243_s19 = sphi %s1337_s19, %s1830_s19   ;;  %s1239_s18 = sphi %s1335_s18, %s1839_s18   ;;  %s1235_s17 = sphi %s1333_s17, %s1838_s17  }
  0x13   : > { %1789 = sst [smem:[#allocation15_spill]] %s1243_s19  ;;  %s33_s9 = sadd.s32 1, %s1291_s30 }
  0x14   : > { %1790 = sst [smem:[#allocation16_spill]] %s1263_s0  ;;  %s36_s10 = sadd.s32 1, %s1295_s5 }
  0x15   : > { %1791 = sst [smem:[#allocation17_spill]] %s1267_s24  ;;  %p34_p0 = scmp.ge.s32.totalorder %s33_s9, 4 }
  0x16   : > { %1792 = sst [smem:[#allocation18_spill]] %s1283_s28  ;;  %p78_p1 = scmp.eq.s32.totalorder %s1299_s6, 0 }
  0x17   : > { %1793 = sst [smem:[#allocation19_spill]] %s1287_s29  ;;  %p84_p2 = scmp.eq.s32.totalorder %s1419_s7, 0 }
  0x18   : > { %1794 = sst [smem:[#allocation20_spill]] %s1291_s30  ;;  %s772_s11 = sadd.s32 4294967295, %s1291_s30 }
  0x19   : > { %1795 = sst [smem:[#allocation21_spill]] %s1295_s5  ;;  %s1849_s9 = smov (%p34_p0, %s33_s9), 0 }
  0x1a   : > { %1796 = sst [smem:[#allocation22_spill]] %s1849_s9  ;;  %s1851_s10 = smov (!%p34_p0, %s36_s10), %s1295_s5 }
  0x1b   : > { %p94_p3 = scmp.gt.s32.totalorder %s772_s11, 0  ;;  %p773_p4 = scmp.lt.s32.totalorder %s772_s11, 1 }
  0x1c   : > { %p38_p5 = scmp.ge.s32.totalorder %s1851_s10, 2  ;;  %s778_s12 = sadd.s32 4294967295, %s1849_s9 }
  0x1d   : > { %s1853_s11 = smov (!%p94_p3, %s772_s11), 0  ;;  %p99_p6 = scmp.gt.s32.totalorder %s778_s12, 0 }
  0x1e   : > { %s1855_s10 = smov (%p38_p5, %s1851_s10), 0  ;;  %s1857_s11 = smov (!%p773_p4, %s1853_s11), 1 }
  0x1f   : > { %1797 = sst [smem:[#allocation23_spill]] %s1855_s10  ;;  %s1437_s13 = ssub.s32 %s1295_s5, %s1855_s10 }
  0x20   : > { %p779_p7 = scmp.lt.s32.totalorder %s778_s12, 1  ;;  %s108_s14 = sadd.s32 1, %s1267_s24 }
  0x21   : > { %s1859_s12 = smov (!%p99_p6, %s778_s12), 0  ;;  %p115_p8 = scmp.ne.s32.totalorder %s1267_s24, %s1263_s0 }
  0x22   : > { %p121_p9 = scmp.ne.s32.totalorder %s1263_s0, %s1259_s23  ;;  %s1861_s12 = smov (!%p779_p7, %s1859_s12), 1 }
  0x23   : > { %p1446_p10 = por %p115_p8, %p78_p1  ;;  %s104_s8 = ssub.s32 %s1857_s11, %s1861_s12 }
  0x24   : > { %p1452_p11 = por %p121_p9, %p84_p2  ;;  %s105_s10 = sor.u32 %s104_s8, %s1437_s13 }
  0x25   : > { %s170_s23 = ssub.s32 %s1291_s30, %s1849_s9  ;;  %p106_p13 = scmp.eq.s32.totalorder %s105_s10, 0 }
  0x26   : > { %s171_s4 = sor.u32 %s170_s23, %s1437_s13  ;;  %s174_s29 = sadd.s32 1, %s1243_s19 }
  0x27   : > { %p172_p0 = scmp.eq.s32.totalorder %s171_s4, 0  ;;  %p184_p3 = scmp.ne.s32.totalorder %s1243_s19, %s1239_s18 }
  0x28   : > { %s1464_s28 = scalar_select %p106_p13, %s1267_s24, %s108_s14  }
  0x29   : > { %s1467_s0 = scalar_select %p172_p0, %s1243_s19, %s174_s29  }
  0x2a   : > { %1800 = sst [smem:[#allocation24_spill]] %s1464_s28  ;;  %p185_p4 = scmp.eq.s32.totalorder %s1419_s7, 7 }
  0x2b   : > { %1801 = sst [smem:[#allocation25_spill]] %s1467_s0  ;;  %p190_p5 = scmp.ne.s32.totalorder %s1239_s18, %s1235_s17 }
  0x2c   : > { %s1802_s12 = sadd.s32 4294967294, %s1299_s6   ;;  %p1476_p7 = por %p185_p4, %p184_p3 }
  0x2d   : > { %p191_p6 = scmp.eq.s32.totalorder %s1802_s12, 7  ;;  %p1779_p9 = scmp.lt.s32.totalorder %s1299_s6, 8 }
  0x2e   : > { %s240_s4 = sand.u32 1, %s1299_s6   ;;  %s242_s29 = sand.u32 1, %s1267_s24  }
  0x2f   : > { %p1480_p8 = por %p191_p6, %p190_p5  ;;  %s802_s14 = sshll.u32 %s242_s29, 5 }
  0x30   : > { %s809_s23 = sshll.u32 %s1857_s11, 2  ;;  %s810_s9 = sshll.u32 %s1295_s5, 3 }
  0x31   : > { %s1804_s10 = scalar_select %p1480_p8, 1, 0 }
  0x32   : > { %s244_s30 = scalar_lea.vmem [#allocation6], %s802_s14  ;;  %s254_s12 = sadd.s32 %s810_s9, %s809_s23 }
  0x33   : > { %1805 = sst [smem:[#allocation26_spill]] %s1804_s10  ;;  %s1489_s28 = sshll.u32 %s244_s30, 4  ;;  %s260_s28 = int_to_ptr.vmem [resolvable:$true] %s1489_s28 }
  0x34   : > { %s811_s0 = sshll.u32 %s254_s12, 3  ;;  %p1496_p13 = pnand %p1779_p9, %p1446_p10 }
  0x35   : > { %s1807_s2 = sld [smem:[#allocation27_spill]]  ;;  %p822_p0 = scmp.ge.s32.totalorder %s1299_s6, 1 }
  0x36   : > { %p296_p3 = scmp.lt.s32.totalorder %s1299_s6, 9  ;;  %s1505_s30 = scalar_lea.sflag [#allocation7], %s240_s4 }
  0x37   : > { %p1034_p10 = pneg %p1496_p13 }
  0x3b   : > { %s256_s29 = scalar_lea.hbm %s1807_s2, %s811_s0  ;;  %s1037_s17 = scalar_lea.hbm %s1807_s2, 128 }
  0x3c   : > { %s257_s11 = sshll.u32 %s256_s29, 4  ;;  %s258_s11 = int_to_ptr.hbm [resolvable:$true] %s257_s11 }
  0x3d   : > { %s1030_s9 = sshra.s32 %s258_s11, 4  ;;  %s1031_s9 = int_to_ptr.hbm [resolvable:$true] %s1030_s9 }
  0x3e   : > { %s1032_s14 = scalar_lea.hbm %s1031_s9, 32 }
  0x3f   : > { %p1033_p4 = scmp.ne.s32.totalorder %s1031_s9, %s1032_s14  ;;  %p1039_p9 = scmp.lt.s32.totalorder %s1037_s17, %s1032_s14 }
  0x41   : > { %p1035_p5 = pnand %p1034_p10, %p1033_p4 }
  0x43   : > { %p1036_p6 = pneg %p1035_p5 }
  0x45   : > { %p1041_p12 = pnand %p1039_p9, %p1036_p6 }
  0x47   : > { %1044 = shalt.err (!%p1041_p12)
}
  0x48   : > { %s1780_s0 = smov 128   ;;  %s1782_s10 = smov 8  }
  0x49   : > { %856 = dma.hbm_to_vmem [thread:$0]  (!%p1496_p13), %s258_s11, 512, %s260_s28, %s1505_s30, %s1780_s0, %s1780_s0, %s1782_s10  }
  0x4a   : > { %p1522_p12 = pnand %p822_p0, %p296_p3  ;;  %s70_s12 = sadd.s32 1, %s1279_s27 }
  0x4b   : > { %p77_p9 = scmp.ne.s32.totalorder %s1279_s27, %s1275_s26  ;;  %p83_p4 = scmp.ne.s32.totalorder %s1275_s26, %s1271_s25 }
  0x4c   : > { %s214_s29 = sand.u32 1, %s1279_s27   ;;  %p1810_p6 = scmp.eq.s32.totalorder %s1437_s13, 0 }
  0x4d   : > { %p79_p10 = por %p78_p1, %p77_p9  ;;  %p1536_p5 = por %p84_p2, %p83_p4 }
  0x4e   : > { %s798_s19 = sshll.u32 %s214_s29, 5  ;;  %s1232_s15 = sshll.u32 %s1295_s5, 5 }
  0x4f   : > { %s1543_s28 = scalar_select %p1810_p6, %s1279_s27, %s70_s12  }
  0x50   : > { %s218_s11 = scalar_lea.vmem [#allocation3], %s798_s19  ;;  %p1811_p13 = scmp.lt.s32.totalorder %s1299_s6, 8 }
  0x51   : > { %s230_s14 = sshll.u32 %s218_s11, 4  ;;  %s227_s0 = scalar_lea.hbm %s1765_s1, %s1232_s15  ;;  %s231_s14 = int_to_ptr.vmem [resolvable:$true] %s230_s14 }
  0x52   : > { %p1548_p0 = pnand %p1811_p13, %p79_p10  ;;  %s228_s10 = sshll.u32 %s227_s0, 4  ;;  %s229_s10 = int_to_ptr.hbm [resolvable:$true] %s228_s10 }
  0x53   : > { %s215_s2 = scalar_lea.sflag [#allocation4], %s214_s29  ;;  %s1060_s24 = sshra.s32 %s229_s10, 4  ;;  %s1061_s24 = int_to_ptr.hbm [resolvable:$true] %s1060_s24 }
  0x54   : > { %s1062_s12 = scalar_lea.hbm %s1061_s24, 32  ;;  %p1064_p9 = pneg %p1548_p0 }
  0x55   : > { %p1063_p3 = scmp.ne.s32.totalorder %s1061_s24, %s1062_s12  ;;  %s1067_s5 = scalar_lea.hbm %s1765_s1, 64 }
  0x56   : > { %p1069_p10 = scmp.lt.s32.totalorder %s1067_s5, %s1062_s12 }
  0x57   : > { %p1065_p4 = pnand %p1064_p9, %p1063_p3 }
  0x59   : > { %p1066_p6 = pneg %p1065_p4 }
  0x5b   : > { %p1071_p13 = pnand %p1069_p10, %p1066_p6 }
  0x5d   : > { %1074 = shalt.err (!%p1071_p13)
}
  0x5e   : > { %s1813_s0 = smov 8   ;;  %s1814_s25 = smov 128  }
  0x5f   : > { %853 = dma.hbm_to_vmem [thread:$0]  (!%p1548_p0), %s229_s10, 512, %s231_s14, %s215_s2, %s1814_s25, %s1814_s25, %s1813_s0  }
  0x60   : > { %s146_s24 = sadd.s32 1, %s1255_s22  ;;  %p153_p3 = scmp.ne.s32.totalorder %s1255_s22, %s1251_s21 }
  0x61   : > { %p1815_p9 = scmp.eq.s32.totalorder %s1437_s13, 0  ;;  %p159_p6 = scmp.ne.s32.totalorder %s1251_s21, %s1247_s20 }
  0x62   : > { %p155_p4 = por %p153_p3, %p78_p1  ;;  %s271_s29 = sand.u32 1, %s1255_s22  }
  0x63   : > { %s1571_s5 = scalar_select %p1815_p9, %s1255_s22, %s146_s24  }
  0x64   : > { %p1580_p10 = por %p159_p6, %p84_p2  ;;  %s812_s17 = sshll.u32 %s271_s29, 5 }
  0x65   : > { %s285_s2 = scalar_lea.hbm %s1767_s3, %s1232_s15  ;;  %s273_s14 = scalar_lea.vmem [#allocation8], %s812_s17 }
  0x66   : > { %s286_s10 = sshll.u32 %s285_s2, 4  ;;  %s288_s11 = sshll.u32 %s273_s14, 4  ;;  %s287_s10 = int_to_ptr.hbm [resolvable:$true] %s286_s10  ;;  %s289_s11 = int_to_ptr.vmem [resolvable:$true] %s288_s11 }
  0x67   : > { %p1817_p0 = scmp.lt.s32.totalorder %s1299_s6, 8  ;;  %300 = sbr.rel (%p1522_p12) target bundleno = 641 (0x281), region = 36 }
  0x68   : > { %s302_s20 = sand.u32 (!%p1522_p12), 1, %s1275_s26  }
  0x69   : > { %p857_p13 = pnand %p1817_p0, %p155_p4  ;;  %s823_s13 = sshll.u32 (!%p1522_p12), %s302_s20, 5 }
  0x6a   : > { %s303_s24 = scalar_lea.sflag (!%p1522_p12), [#allocation4], %s302_s20  ;;  %s306_s15 = scalar_lea.vmem (!%p1522_p12), [#allocation3], %s823_s13 }
  0x6b   : > { %859 = dma.hbm_to_vmem [thread:$0]  (!%p857_p13), %s287_s10, 512, %s289_s11, %s1505_s30, %s1814_s25, %s1814_s25, %s1813_s0  }
  0x6c   : > { %1217 = dma.done.wait (%p1536_p5), %s303_s24, 512  }
  0x6d   : > { %1219 = vsyncadd (%p1536_p5), %s303_s24, 4294966784  ;;  %s1818_s29 = sld [smem:[#allocation16_spill]]  ;;  %s312_s17 = sand.u32 1, %s1419_s7  }
  0x6e   : > { %s313_s0 = scalar_lea.sflag [#allocation7], %s312_s17 }
  0x73   : > { %s314_s12 = sand.u32 1, %s1818_s29  }
  0x74   : > { %s824_s30 = sshll.u32 %s314_s12, 5 }
  0x75   : > { %s1602_s4 = scalar_lea.vmem [#allocation6], %s824_s30 }
  0x76   : > { %1221 = dma.done.wait (%p1452_p11), %s313_s0, 512  }
  0x77   : > { %1223 = vsyncadd (%p1452_p11), %s313_s0, 4294966784  ;;  %s324_s25 = sand.u32 1, %s1251_s21  }
  0x78   : > { %s825_s19 = sshll.u32 %s324_s25, 5 }
  0x79   : > { %s1609_s9 = scalar_lea.vmem [#allocation8], %s825_s19 }
  0x7a   : > { %1225 = dma.done.wait (%p1580_p10), %s313_s0, 512  }
  0x7b   : > { %1227 = vsyncadd (%p1580_p10), %s313_s0, 4294966784  ;;  %s359_s7 = sand.u32 1, %s1239_s18   ;;  %s378_s2 = sld [smem:[#allocation2]] }
  0x7c   : > { %s826_s10 = sshll.u32 %s359_s7, 5  ;;  %s1819_s11 = sld [smem:[#allocation18_spill]] }
  0x7d   : > { %s1620_s16 = scalar_lea.vmem [#allocation9], %s826_s10 }
  0x81   : > { %s1618_s14 = smul.f32 11.313708, %s378_s2 }
  0x82   : > { %p827_p1 = scmp.ge.s32.totalorder %s1819_s11, 1 }
  0x84   : > { %383 = sbr.rel (%p827_p1) target bundleno = 290 (0x122), region = 52 }
  0x89   : > { %v386_v0 = vld [vmem:[%s306_s15 + $0x10] sm:$0xff]  ;;  %v384_v1 = vld [vmem:[%s306_s15] sm:$0xff]  ;;  %v1625_v4 = vld [vmem:[%s306_s15 + $0x18] sm:$0xff]  ;;  %v448_v32 = vstv %s1618_s14 }
  0x8a   : > { %v390_v2 = vmul.f32 %v386_v0, %v386_v0  ;;  %v388_v3 = vmul.f32 %v384_v1, %v384_v1  ;;  %v1627_v5 = vld [vmem:[%s306_s15 + $0x8] sm:$0xff]  ;;  %v391_v6 = vmul.f32 %v1625_v4, %v1625_v4 }
  0x8b   : > { %v389_v7 = vmul.f32 %v1627_v5, %v1627_v5 }
  0x8c   : > { %396 = vadd.xlane.f32.xlu1 %v390_v2  ;;  %392 = vadd.xlane.f32.xlu0 %v388_v3 }
  0x94   : > { %398 = vadd.xlane.f32.xlu1 %v391_v6  ;;  %394 = vadd.xlane.f32.xlu0 %v389_v7 }
  0xff   : > { %v397_v8 = vpop.xlane.xlu1 %396  ;;  %v393_v9 = vpop.xlane.xlu0 %392 }
 0x100   : > { %v402_v10 = vmax.f32 %v397_v8, 1e-24  ;;  %v400_v11 = vmax.f32 %v393_v9, 1e-24 }
 0x102   : > { %1006 = vrsqrt.f32 %v402_v10  ;;  %vm430_vm2 = vweird.f32 %v402_v10  ;;  %vm410_vm4 = vweird.f32 %v400_v11 }
 0x103   : > { %1008 = vrsqrt.f32 %v400_v11 }
 0x107   : > { %v399_v12 = vpop.xlane.xlu1 %398  ;;  %v395_v13 = vpop.xlane.xlu0 %394 }
 0x108   : > { %v1007_v14 = vpop.eup %1006  ;;  %v403_v15 = vmax.f32 %v399_v12, 1e-24  ;;  %v401_v16 = vmax.f32 %v395_v13, 1e-24 }
 0x109   : > { %v1009_v17 = vpop.eup %1008  ;;  %v425_v18 = vmul.f32 %v1007_v14, %v402_v10  ;;  %vm431_vm0 = vweird.f32 %v1007_v14 }
 0x10a   : > { %v405_v19 = vmul.f32 %v1009_v17, %v400_v11  ;;  %1010 = vrsqrt.f32 %v403_v15  ;;  %vm411_vm1 = vweird.f32 %v1009_v17  ;;  %vm432_vm3 = vmor %vm430_vm2, %vm431_vm0  ;;  %vm440_vm8 = vweird.f32 %v403_v15 }
 0x10b   : > { %v426_v20 = vmul.f32 %v1007_v14, %v425_v18  ;;  %1012 = vrsqrt.f32 %v401_v16  ;;  %vm412_vm5 = vmor %vm410_vm4, %vm411_vm1  ;;  %vm420_vm10 = vweird.f32 %v401_v16 }
 0x10c   : > { %v406_v21 = vmul.f32 %v1009_v17, %v405_v19 }
 0x10d   : > { %v427_v22 = vmul.f32 0.5, %v426_v20 }
 0x10e   : > { %v407_v23 = vmul.f32 0.5, %v406_v21 }
 0x10f   : > { %v428_v24 = vsub.f32 1.5, %v427_v22 }
 0x110   : > { %v1011_v25 = vpop.eup %1010  ;;  %v408_v26 = vsub.f32 1.5, %v407_v23 }
 0x111   : > { %v1013_v27 = vpop.eup %1012  ;;  %v429_v28 = vmul.f32 %v1007_v14, %v428_v24  ;;  %v435_v29 = vmul.f32 %v1011_v25, %v403_v15  ;;  %vm441_vm6 = vweird.f32 %v1011_v25 }
 0x112   : > { %v409_v30 = vmul.f32 %v1009_v17, %v408_v26  ;;  %v415_v31 = vmul.f32 %v1013_v27, %v401_v16  ;;  %vm421_vm7 = vweird.f32 %v1013_v27  ;;  %vm442_vm9 = vmor %vm440_vm8, %vm441_vm6 }
 0x113   : > { %v433_v33 = vsel %vm432_vm3, %v1007_v14, %v429_v28  ;;  %v436_v34 = vmul.f32 %v1011_v25, %v435_v29  ;;  %vm422_vm11 = vmor %vm420_vm10, %vm421_vm7 }
 0x114   : > { %v446_v35 = vmul.f32 %v433_v33, %v386_v0  ;;  %v413_v36 = vsel %vm412_vm5, %v1009_v17, %v409_v30  ;;  %v416_v37 = vmul.f32 %v1013_v27, %v415_v31 }
 0x115   : > { %v444_v38 = vmul.f32 %v413_v36, %v384_v1  ;;  %v437_v39 = vmul.f32 0.5, %v436_v34 }
 0x116   : > { %v451_v40 = vmul.f32 %v448_v32, %v446_v35  ;;  %v417_v41 = vmul.f32 0.5, %v416_v37 }
 0x117   : > { %v449_v42 = vmul.f32 %v448_v32, %v444_v38  ;;  %v438_v43 = vsub.f32 1.5, %v437_v39 }
 0x118   : > { %455 = vst [vmem:[%s1620_s16 + $0x10] sm:$0xff] %v451_v40  ;;  %v418_v44 = vsub.f32 1.5, %v417_v41 }
 0x119   : > { %453 = vst [vmem:[%s1620_s16] sm:$0xff] %v449_v42  ;;  %v439_v45 = vmul.f32 %v1011_v25, %v438_v43 }
 0x11a   : > { %v419_v46 = vmul.f32 %v1013_v27, %v418_v44 }
 0x11b   : > { %v443_v47 = vsel %vm442_vm9, %v1011_v25, %v439_v45 }
 0x11c   : > { %v447_v48 = vmul.f32 %v443_v47, %v1625_v4  ;;  %v423_v49 = vsel %vm422_vm11, %v1013_v27, %v419_v46 }
 0x11d   : > { %v445_v50 = vmul.f32 %v423_v49, %v1627_v5 }
 0x11e   : > { %v452_v51 = vmul.f32 %v448_v32, %v447_v48 }
 0x11f   : > { %v450_v52 = vmul.f32 %v448_v32, %v445_v50 }
 0x120   : > { %456 = vst [vmem:[%s1620_s16 + $0x18] sm:$0xff] %v452_v51 }
 0x121   : > { %454 = vst [vmem:[%s1620_s16 + $0x8] sm:$0xff] %v450_v52 }
 0x122 PF: > { %s1820_s23 = sld [smem:[#allocation18_spill]] }
 0x128   : > { %p458_p2 = scmp.lt.s32.totalorder %s1820_s23, 3 }
 0x12a   : > { %p459_p11 = pnand %p827_p1, %p458_p2 }
 0x12c   : > { %462 = sbr.rel (%p459_p11) target bundleno = 458 (0x1ca), region = 56 }
 0x131   : > { %v465_v53 = vld [vmem:[%s1602_s4 + $0x10] sm:$0xff]  ;;  %v463_v54 = vld [vmem:[%s1602_s4] sm:$0xff]  ;;  %v1648_v57 = vld [vmem:[%s1602_s4 + $0x18] sm:$0xff]  ;;  %v527_v21 = vstv %s1618_s14 }
 0x132   : > { %v469_v55 = vmul.f32 %v465_v53, %v465_v53  ;;  %v467_v56 = vmul.f32 %v463_v54, %v463_v54  ;;  %v1651_v58 = vld [vmem:[%s1602_s4 + $0x8] sm:$0xff]  ;;  %v470_v59 = vmul.f32 %v1648_v57, %v1648_v57 }
 0x133   : > { %v468_v60 = vmul.f32 %v1651_v58, %v1651_v58 }
 0x134   : > { %475 = vadd.xlane.f32.xlu1 %v469_v55  ;;  %471 = vadd.xlane.f32.xlu0 %v467_v56 }
 0x13c   : > { %477 = vadd.xlane.f32.xlu1 %v470_v59  ;;  %473 = vadd.xlane.f32.xlu0 %v468_v60 }
 0x1a7   : > { %v476_v61 = vpop.xlane.xlu1 %475  ;;  %v472_v62 = vpop.xlane.xlu0 %471 }
 0x1a8   : > { %v481_v63 = vmax.f32 %v476_v61, 1e-24  ;;  %v479_v0 = vmax.f32 %v472_v62, 1e-24 }
 0x1aa   : > { %1014 = vrsqrt.f32 %v481_v63  ;;  %vm509_vm14 = vweird.f32 %v481_v63  ;;  %vm489_vm0 = vweird.f32 %v479_v0 }
 0x1ab   : > { %1016 = vrsqrt.f32 %v479_v0 }
 0x1af   : > { %v478_v1 = vpop.xlane.xlu1 %477  ;;  %v474_v2 = vpop.xlane.xlu0 %473 }
 0x1b0   : > { %v1015_v3 = vpop.eup %1014  ;;  %v482_v4 = vmax.f32 %v478_v1, 1e-24  ;;  %v480_v5 = vmax.f32 %v474_v2, 1e-24 }
 0x1b1   : > { %v1017_v6 = vpop.eup %1016  ;;  %v504_v7 = vmul.f32 %v1015_v3, %v481_v63  ;;  %vm510_vm12 = vweird.f32 %v1015_v3 }
 0x1b2   : > { %v484_v8 = vmul.f32 %v1017_v6, %v479_v0  ;;  %1018 = vrsqrt.f32 %v482_v4  ;;  %vm490_vm13 = vweird.f32 %v1017_v6  ;;  %vm511_vm15 = vmor %vm509_vm14, %vm510_vm12  ;;  %vm519_vm4 = vweird.f32 %v482_v4 }
 0x1b3   : > { %v505_v9 = vmul.f32 %v1015_v3, %v504_v7  ;;  %1020 = vrsqrt.f32 %v480_v5  ;;  %vm491_vm1 = vmor %vm489_vm0, %vm490_vm13  ;;  %vm499_vm6 = vweird.f32 %v480_v5 }
 0x1b4   : > { %v485_v10 = vmul.f32 %v1017_v6, %v484_v8 }
 0x1b5   : > { %v506_v11 = vmul.f32 0.5, %v505_v9 }
 0x1b6   : > { %v486_v12 = vmul.f32 0.5, %v485_v10 }
 0x1b7   : > { %v507_v13 = vsub.f32 1.5, %v506_v11 }
 0x1b8   : > { %v1019_v14 = vpop.eup %1018  ;;  %v487_v15 = vsub.f32 1.5, %v486_v12 }
 0x1b9   : > { %v1021_v16 = vpop.eup %1020  ;;  %v508_v17 = vmul.f32 %v1015_v3, %v507_v13  ;;  %v514_v18 = vmul.f32 %v1019_v14, %v482_v4  ;;  %vm520_vm2 = vweird.f32 %v1019_v14 }
 0x1ba   : > { %v488_v19 = vmul.f32 %v1017_v6, %v487_v15  ;;  %v494_v20 = vmul.f32 %v1021_v16, %v480_v5  ;;  %vm500_vm3 = vweird.f32 %v1021_v16  ;;  %vm521_vm5 = vmor %vm519_vm4, %vm520_vm2 }
 0x1bb   : > { %v512_v22 = vsel %vm511_vm15, %v1015_v3, %v508_v17  ;;  %v515_v23 = vmul.f32 %v1019_v14, %v514_v18  ;;  %vm501_vm7 = vmor %vm499_vm6, %vm500_vm3 }
 0x1bc   : > { %v525_v24 = vmul.f32 %v512_v22, %v465_v53  ;;  %v492_v25 = vsel %vm491_vm1, %v1017_v6, %v488_v19  ;;  %v495_v26 = vmul.f32 %v1021_v16, %v494_v20 }
 0x1bd   : > { %v523_v27 = vmul.f32 %v492_v25, %v463_v54  ;;  %v516_v28 = vmul.f32 0.5, %v515_v23 }
 0x1be   : > { %v530_v29 = vmul.f32 %v527_v21, %v525_v24  ;;  %v496_v30 = vmul.f32 0.5, %v495_v26 }
 0x1bf   : > { %v528_v31 = vmul.f32 %v527_v21, %v523_v27  ;;  %v517_v32 = vsub.f32 1.5, %v516_v28 }
 0x1c0   : > { %534 = vst [vmem:[%s1620_s16 + $0x10] sm:$0xff] %v530_v29  ;;  %v497_v33 = vsub.f32 1.5, %v496_v30 }
 0x1c1   : > { %532 = vst [vmem:[%s1620_s16] sm:$0xff] %v528_v31  ;;  %v518_v34 = vmul.f32 %v1019_v14, %v517_v32 }
 0x1c2   : > { %v498_v35 = vmul.f32 %v1021_v16, %v497_v33 }
 0x1c3   : > { %v522_v36 = vsel %vm521_vm5, %v1019_v14, %v518_v34 }
 0x1c4   : > { %v526_v37 = vmul.f32 %v522_v36, %v1648_v57  ;;  %v502_v38 = vsel %vm501_vm7, %v1021_v16, %v498_v35 }
 0x1c5   : > { %v524_v39 = vmul.f32 %v502_v38, %v1651_v58 }
 0x1c6   : > { %v531_v40 = vmul.f32 %v527_v21, %v526_v37 }
 0x1c7   : > { %v529_v41 = vmul.f32 %v527_v21, %v524_v39 }
 0x1c8   : > { %535 = vst [vmem:[%s1620_s16 + $0x18] sm:$0xff] %v531_v40 }
 0x1c9   : > { %533 = vst [vmem:[%s1620_s16 + $0x8] sm:$0xff] %v529_v41 }
 0x1ca PF: > { %539 = sbr.rel (%p458_p2) target bundleno = 616 (0x268), region = 60 }
 0x1cf   : > { %v542_v42 = vld [vmem:[%s1609_s9 + $0x10] sm:$0xff]  ;;  %v540_v43 = vld [vmem:[%s1609_s9] sm:$0xff]  ;;  %v1669_v46 = vld [vmem:[%s1609_s9 + $0x18] sm:$0xff]  ;;  %v604_v10 = vstv %s1618_s14 }
 0x1d0   : > { %v546_v44 = vmul.f32 %v542_v42, %v542_v42  ;;  %v544_v45 = vmul.f32 %v540_v43, %v540_v43  ;;  %v1672_v47 = vld [vmem:[%s1609_s9 + $0x8] sm:$0xff]  ;;  %v547_v48 = vmul.f32 %v1669_v46, %v1669_v46 }
 0x1d1   : > { %v545_v49 = vmul.f32 %v1672_v47, %v1672_v47 }
 0x1d2   : > { %552 = vadd.xlane.f32.xlu1 %v546_v44  ;;  %548 = vadd.xlane.f32.xlu0 %v544_v45 }
 0x1da   : > { %554 = vadd.xlane.f32.xlu1 %v547_v48  ;;  %550 = vadd.xlane.f32.xlu0 %v545_v49 }
 0x245   : > { %v553_v50 = vpop.xlane.xlu1 %552  ;;  %v549_v51 = vpop.xlane.xlu0 %548 }
 0x246   : > { %v558_v52 = vmax.f32 %v553_v50, 1e-24  ;;  %v556_v53 = vmax.f32 %v549_v51, 1e-24 }
 0x248   : > { %1022 = vrsqrt.f32 %v558_v52  ;;  %vm586_vm10 = vweird.f32 %v558_v52  ;;  %vm566_vm12 = vweird.f32 %v556_v53 }
 0x249   : > { %1024 = vrsqrt.f32 %v556_v53 }
 0x24d   : > { %v555_v54 = vpop.xlane.xlu1 %554  ;;  %v551_v55 = vpop.xlane.xlu0 %550 }
 0x24e   : > { %v1023_v56 = vpop.eup %1022  ;;  %v559_v57 = vmax.f32 %v555_v54, 1e-24  ;;  %v557_v58 = vmax.f32 %v551_v55, 1e-24 }
 0x24f   : > { %v1025_v59 = vpop.eup %1024  ;;  %v581_v60 = vmul.f32 %v1023_v56, %v558_v52  ;;  %vm587_vm8 = vweird.f32 %v1023_v56 }
 0x250   : > { %v561_v61 = vmul.f32 %v1025_v59, %v556_v53  ;;  %1026 = vrsqrt.f32 %v559_v57  ;;  %vm567_vm9 = vweird.f32 %v1025_v59  ;;  %vm588_vm11 = vmor %vm586_vm10, %vm587_vm8  ;;  %vm596_vm0 = vweird.f32 %v559_v57 }
 0x251   : > { %v582_v62 = vmul.f32 %v1023_v56, %v581_v60  ;;  %1028 = vrsqrt.f32 %v557_v58  ;;  %vm568_vm13 = vmor %vm566_vm12, %vm567_vm9  ;;  %vm576_vm2 = vweird.f32 %v557_v58 }
 0x252   : > { %v562_v63 = vmul.f32 %v1025_v59, %v561_v61 }
 0x253   : > { %v583_v0 = vmul.f32 0.5, %v582_v62 }
 0x254   : > { %v563_v1 = vmul.f32 0.5, %v562_v63 }
 0x255   : > { %v584_v2 = vsub.f32 1.5, %v583_v0 }
 0x256   : > { %v1027_v3 = vpop.eup %1026  ;;  %v564_v4 = vsub.f32 1.5, %v563_v1 }
 0x257   : > { %v1029_v5 = vpop.eup %1028  ;;  %v585_v6 = vmul.f32 %v1023_v56, %v584_v2  ;;  %v591_v7 = vmul.f32 %v1027_v3, %v559_v57  ;;  %vm597_vm14 = vweird.f32 %v1027_v3 }
 0x258   : > { %v565_v8 = vmul.f32 %v1025_v59, %v564_v4  ;;  %v571_v9 = vmul.f32 %v1029_v5, %v557_v58  ;;  %vm577_vm15 = vweird.f32 %v1029_v5  ;;  %vm598_vm1 = vmor %vm596_vm0, %vm597_vm14 }
 0x259   : > { %v589_v11 = vsel %vm588_vm11, %v1023_v56, %v585_v6  ;;  %v592_v12 = vmul.f32 %v1027_v3, %v591_v7  ;;  %vm578_vm3 = vmor %vm576_vm2, %vm577_vm15 }
 0x25a   : > { %v602_v13 = vmul.f32 %v589_v11, %v542_v42  ;;  %v569_v14 = vsel %vm568_vm13, %v1025_v59, %v565_v8  ;;  %v572_v15 = vmul.f32 %v1029_v5, %v571_v9 }
 0x25b   : > { %v600_v16 = vmul.f32 %v569_v14, %v540_v43  ;;  %v593_v17 = vmul.f32 0.5, %v592_v12 }
 0x25c   : > { %v607_v18 = vmul.f32 %v604_v10, %v602_v13  ;;  %v573_v19 = vmul.f32 0.5, %v572_v15 }
 0x25d   : > { %v605_v20 = vmul.f32 %v604_v10, %v600_v16  ;;  %v594_v21 = vsub.f32 1.5, %v593_v17 }
 0x25e   : > { %611 = vst [vmem:[%s1620_s16 + $0x10] sm:$0xff] %v607_v18  ;;  %v574_v22 = vsub.f32 1.5, %v573_v19 }
 0x25f   : > { %609 = vst [vmem:[%s1620_s16] sm:$0xff] %v605_v20  ;;  %v595_v23 = vmul.f32 %v1027_v3, %v594_v21 }
 0x260   : > { %v575_v24 = vmul.f32 %v1029_v5, %v574_v22 }
 0x261   : > { %v599_v25 = vsel %vm598_vm1, %v1027_v3, %v595_v23 }
 0x262   : > { %v603_v26 = vmul.f32 %v599_v25, %v1669_v46  ;;  %v579_v27 = vsel %vm578_vm3, %v1029_v5, %v575_v24 }
 0x263   : > { %v601_v28 = vmul.f32 %v579_v27, %v1672_v47 }
 0x264   : > { %v608_v29 = vmul.f32 %v604_v10, %v603_v26 }
 0x265   : > { %v606_v30 = vmul.f32 %v604_v10, %v601_v28 }
 0x266   : > { %612 = vst [vmem:[%s1620_s16 + $0x18] sm:$0xff] %v608_v29 }
 0x267   : > { %610 = vst [vmem:[%s1620_s16 + $0x8] sm:$0xff] %v606_v30 }
 0x268 PF: > { %s1822_s13 = sld [smem:[#allocation18_spill]]  ;;  %s628_s17 = sshll.u32 %s1620_s16, 4  ;;  %s629_s17 = int_to_ptr.vmem [resolvable:$true] %s628_s17 }
 0x269   : > { %s1823_s24 = sld [smem:[#allocation19_spill]]  ;;  %s614_s10 = scalar_lea.sflag [#allocation5], %s359_s7 }
 0x26a   : > { %s1824_s25 = sld [smem:[#allocation28_spill]] }
 0x26e   : > { %s830_s15 = sshll.u32 %s1822_s13, 2 }
 0x26f   : > { %s831_s29 = sshll.u32 %s1823_s24, 4 }
 0x270   : > { %s625_s12 = sadd.s32 %s831_s29, %s830_s15  ;;  %s1825_s9 = smov %s1824_s25 }
 0x271   : > { %s832_s30 = sshll.u32 %s625_s12, 3  ;;  %s1140_s20 = scalar_lea.hbm %s1825_s9, 256 }
 0x272   : > { %s627_s19 = scalar_lea.hbm %s1824_s25, %s832_s30 }
 0x273   : > { %s630_s2 = sshll.u32 %s627_s19, 4  ;;  %s631_s2 = int_to_ptr.hbm [resolvable:$true] %s630_s2 }
 0x274   : > { %s1134_s14 = sshra.s32 %s631_s2, 4  ;;  %s1135_s14 = int_to_ptr.hbm [resolvable:$true] %s1134_s14 }
 0x275   : > { %s1136_s11 = scalar_lea.hbm %s1135_s14, 32  ;;  %p1141_p9 = scmp.lt.s32.totalorder %s1135_s14, %s1825_s9 }
 0x276   : > { %p1137_p12 = scmp.ne.s32.totalorder %s1135_s14, %s1136_s11  ;;  %p1142_p4 = scmp.lt.s32.totalorder %s1140_s20, %s1136_s11 }
 0x278   : > { %p1138_p5 = pnand %p1137_p12, %p1476_p7  ;;  %p1143_p6 = por %p1142_p4, %p1141_p9 }
 0x27a   : > { %p1139_p3 = pneg %p1138_p5 }
 0x27c   : > { %p1144_p10 = pnand %p1143_p6, %p1139_p3 }
 0x27e   : > { %1147 = shalt.err (!%p1144_p10)
}
 0x27f   : > { %s1303_s7 = smov 128   ;;  %s1304_s15 = smov 8  }
 0x280   : > { %848 = dma.vmem_to_hbm [thread:$0]  (%p1476_p7), %s629_s17, 512, %s631_s2, %s614_s10, %s1303_s7, %s1303_s7, %s1304_s15  }
 0x281 PF: > { %s1826_s29 = sld [smem:[#allocation14_spill]]  ;;  %p865_p0 = scmp.ge.s32.totalorder %s1299_s6, 2 }
 0x283   : > { %p861_p13 = pnand %p865_p0, %p1480_p8 }
 0x285   : > { %p862_p1 = pneg %p861_p13 }
 0x287   : > { %s645_s30 = sand.u32 1, %s1826_s29  }
 0x288   : > { %s646_s0 = scalar_lea.sflag [#allocation5], %s645_s30 }
 0x289   : > { %1229 = dma.done.wait (%p862_p1), %s646_s0, 512  }
 0x28a   : > { %1231 = vsyncadd (%p862_p1), %s646_s0, 4294966784  ;;  %s24_s6 = sadd.s32 1, %s1299_s6   ;;  %s1829_s8 = sld [smem:[#allocation15_spill]] }
 0x28b   : > { %p1708_p2 = scmp.ge.s32.totalorder %s24_s6, 10   ;;  %s1830_s19 = sld [smem:[#allocation25_spill]] }
 0x28c   : > { %s1831_s23 = sld [smem:[#allocation16_spill]]  ;;  %s1838_s17 = smov %s1239_s18 }
 0x28d   : > { %s1832_s0 = sld [smem:[#allocation17_spill]]  ;;  %s1840_s20 = smov %s1251_s21 }
 0x28e   : > { %s1833_s24 = sld [smem:[#allocation24_spill]]  ;;  %s1841_s21 = smov %s1255_s22 }
 0x28f   : > { %s1834_s2 = sld [smem:[#allocation20_spill]]  ;;  %s1842_s22 = smov %s1571_s5 }
 0x290   : > { %s1835_s29 = sld [smem:[#allocation21_spill]]  ;;  %s1839_s18 = smov %s1829_s8 }
 0x291   : > { %s1836_s30 = sld [smem:[#allocation22_spill]]  ;;  %s1843_s25 = smov %s1275_s26 }
 0x292   : > { %s1837_s10 = sld [smem:[#allocation23_spill]]  ;;  %s1844_s26 = smov %s1279_s27 }
 0x293   : > { %s1845_s27 = smov %s1543_s28 }
 0x294   :  { %23 = sbr.rel (!%p1708_p2) target bundleno = 18 (0x12), region = 117 }
 0x295   : > { %s1846_s28 = smov %s1834_s2 }
 0x298   : > { %s1847_s5 = smov %s1837_s10 }
 0x299   :  { %652 = vsyncpa [#allocation4], 1 }
 0x29a   :  { %654 = vsyncpa [#allocation4 + $0x1], 1 }
 0x29b   :  { %655 = vsyncpa [#allocation7], 1 }
 0x29c   :  { %657 = vsyncpa [#allocation7 + $0x1], 1 }
 0x29d   :  { %658 = vsyncpa [#allocation5], 1 }
 0x29e   :  { %660 = vsyncpa [#allocation5 + $0x1], 1 }

</bundles_post_ra>
